<compile_context>
chip_gen: v7x
topology: tpu7x:2x2x1
jax: 0.10.0
libtpu: 0.0.40
codegen_flags: <defaults>
</compile_context>

<pallas_src>
import functools
import math

import jax
import jax.numpy as jnp
from jax.experimental import pallas as pl
from jax.experimental.pallas import tpu as pltpu


def _round_up(x: int, m: int) -> int:
    return ((x + m - 1) // m) * m


def _sublane_min(dtype) -> int:
    """Minimum sublane tile for dtype: 8 (f32), 16 (bf16/f16), 32 (int8/fp8)."""
    bits = jnp.dtype(dtype).itemsize * 8
    return max(8, 256 // bits)


def make_positional_encoding_table(d_model: int, max_len: int = 5000,
                                   dtype=jnp.float32) -> jnp.ndarray:
    """Sinusoidal table identical to the PyTorch buffer, squeezed to 2-D.

    Build it once at init in the *model dtype* so the forward never pays a
    per-call (max_len x d_model) cast.  Returns shape (max_len, d_model); the
    PyTorch buffer is the same values viewed as (max_len, 1, d_model).
    """
    assert d_model % 2 == 0, "sinusoidal positional encoding needs even d_model"
    position = jnp.arange(0, max_len, dtype=jnp.float32)[:, None]             # (L, 1)
    div_term = jnp.exp(
        jnp.arange(0, d_model, 2, dtype=jnp.float32) * (-math.log(10000.0) / d_model)
    )                                                                          # (D/2,)
    pe = jnp.zeros((max_len, d_model), dtype=jnp.float32)
    pe = pe.at[:, 0::2].set(jnp.sin(position * div_term))
    pe = pe.at[:, 1::2].set(jnp.cos(position * div_term))
    return pe.astype(dtype)


def _pe_add_3d_kernel(x_ref, pe_ref, o_ref):
    # x/o: (tS, B, D); pe: (tS, D) dense 2-D block -> broadcast over batch.
    o_ref[...] = x_ref[...] + pe_ref[...][:, None, :]


def _pe_add_collapsed_kernel(x_ref, pe_ref, o_ref, *, batch: int):
    # x/o: (tS, B*D) lane-collapsed; pe: (tS, D).  Lane-replicate pe B times
    # (128-aligned concat when B > 1, since this path requires D % 128 == 0);
    # this is VPU/XLU filler that hides under DMA in a bandwidth-bound add.
    pe = pe_ref[...]
    if batch > 1:
        pe = jnp.concatenate([pe] * batch, axis=-1)
    o_ref[...] = x_ref[...] + pe


def _choose_block_rows(total_rows: int, padded_row_bytes: int, *, sublane: int,
                       target_bytes: int = 2 << 20) -> int:
    """Seq rows per block.

    Budgets the *padded* (physical) VMEM bytes of one x block, not logical
    bytes.  ~2 MiB per x block keeps the double-buffered 2 x (x + out + pe)
    footprint under ~12 MiB -> inside v5e's 16 MiB scoped-VMEM default
    (v6e/v7x have 32 MiB and could take 4-6 MiB blocks, but 2 MiB is already
    >85% of HBM roofline and portable across generations).

    Enforces:
      * rows is a multiple of the dtype's min sublane tile (rows is the
        sublane dim of the 2-D pe block, and of x in the collapsed path);
      * >= 4 grid steps for tensors > ~1 MiB -- a 1-block grid disables DMA
        pipelining and leaves one of v7x's two TensorCores idle.
    """
    rows = max(sublane,
               (target_bytes // max(1, padded_row_bytes)) // sublane * sublane)
    total_bytes = total_rows * padded_row_bytes
    if total_bytes > (1 << 20):
        cap = max(sublane, _round_up(pl.cdiv(total_rows, 4), sublane))
        rows = min(rows, cap)
    # Rounding a whole-sequence block *up* to the sublane tile is fine: it
    # becomes a single partial block, and keeps the pe BlockSpec legal.
    rows = min(rows, _round_up(total_rows, sublane))
    return int(rows)


@functools.partial(jax.jit, static_argnames=("block_seq",))
def positional_encoding_forward(x: jnp.ndarray, pe: jnp.ndarray, *,
                                block_seq: int | None = None) -> jnp.ndarray:
    """x: [seq_len, batch, d_model]; pe: [max_len, d_model] (or [max_len, 1, d_model]).

    If block_seq is given it should be a multiple of the dtype's sublane tile
    (8 for f32, 16 for bf16).
    """
    seq_len, batch, d_model = x.shape
    if pe.ndim == 3:
        assert pe.shape[1] == 1
        pe = pe.reshape(pe.shape[0], pe.shape[2])   # free squeeze of torch's axis
    max_len = pe.shape[0]
    assert pe.shape == (max_len, d_model)
    assert seq_len <= max_len
    if pe.dtype != x.dtype:
        # Fallback only -- build the table in the model dtype at init
        # (make_positional_encoding_table(dtype=...)) so this never runs.
        pe = pe.astype(x.dtype)

    itemsize = jnp.dtype(x.dtype).itemsize
    sublane = _sublane_min(x.dtype)
    compiler_params = pltpu.CompilerParams(dimension_semantics=("parallel",))
    cost = pl.CostEstimate(
        flops=seq_len * batch * d_model,
        transcendentals=0,
        bytes_accessed=(2 * seq_len * batch * d_model + seq_len * d_model) * itemsize,
    )

    # Collapse batch into lanes when the 3-D layout would be sublane-padded.
    use_collapsed = (batch == 1) or (batch < sublane and d_model % 128 == 0)

    if use_collapsed:
        lanes = batch * d_model
        x2 = x.reshape(seq_len, lanes)              # free reshape (contiguous)
        padded_row_bytes = _round_up(lanes, 128) * itemsize
        tS = block_seq if block_seq is not None else _choose_block_rows(
            seq_len, padded_row_bytes, sublane=sublane)
        grid = (pl.cdiv(seq_len, tS),)
        out2 = pl.pallas_call(
            functools.partial(_pe_add_collapsed_kernel, batch=batch),
            out_shape=jax.ShapeDtypeStruct((seq_len, lanes), x.dtype),
            grid_spec=pltpu.PrefetchScalarGridSpec(
                num_scalar_prefetch=0,
                grid=grid,
                in_specs=[
                    pl.BlockSpec((tS, lanes), lambda i: (i, 0)),
                    # Dense 2-D pe block straight from the resident table.
                    pl.BlockSpec((tS, d_model), lambda i: (i, 0)),
                ],
                out_specs=pl.BlockSpec((tS, lanes), lambda i: (i, 0)),
            ),
            compiler_params=compiler_params,
            cost_estimate=cost,
        )(x2, pe)
        return out2.reshape(seq_len, batch, d_model)

    # General 3-D path (batch >= sublane tile): x/out blocks take the full
    # (batch, d_model) minor extents (dense when d_model % 128 == 0); pe stays
    # a dense 2-D block and is broadcast over batch inside the kernel.
    padded_row_bytes = (_round_up(batch, sublane) * _round_up(d_model, 128)
                        * itemsize)
    tS = block_seq if block_seq is not None else _choose_block_rows(
        seq_len, padded_row_bytes, sublane=sublane)
    grid = (pl.cdiv(seq_len, tS),)
    return pl.pallas_call(
        _pe_add_3d_kernel,
        out_shape=jax.ShapeDtypeStruct((seq_len, batch, d_model), x.dtype),
        grid_spec=pltpu.PrefetchScalarGridSpec(
            num_scalar_prefetch=0,
            grid=grid,
            in_specs=[
                pl.BlockSpec((tS, batch, d_model), lambda i: (i, 0, 0)),
                pl.BlockSpec((tS, d_model), lambda i: (i, 0)),
            ],
            out_specs=pl.BlockSpec((tS, batch, d_model), lambda i: (i, 0, 0)),
        ),
        compiler_params=compiler_params,
        cost_estimate=cost,
    )(x, pe)


if __name__ == "__main__":
    key = jax.random.PRNGKey(0)
    keys = jax.random.split(key, 8)

    def ref(x, pe2d):
        return x + pe2d[: x.shape[0]][:, None, :].astype(x.dtype)

    # 1) Small demo shape, [seq, batch, d_model] layout -> 3-D path, tiny grid.
    S, B, D, L = 8, 2, 32, 64
    pe = make_positional_encoding_table(D, L)
    x = jax.random.normal(keys[0], (S, B, D), dtype=jnp.float32)
    out = jax.block_until_ready(positional_encoding_forward(x, pe))
    assert out.shape == (S, B, D)
    assert jnp.allclose(out, ref(x, pe), atol=1e-6, rtol=1e-6)

    # 2) Collapsed small-batch path, multi-block grid with a partial trailing
    #    block: grid = cdiv(20, 8) = 3.
    S2, B2, D2 = 20, 4, 128
    pe2 = make_positional_encoding_table(D2, 64)
    x2 = jax.random.normal(keys[1], (S2, B2, D2), dtype=jnp.float32)
    out2 = jax.block_until_ready(positional_encoding_forward(x2, pe2, block_seq=8))
    assert jnp.allclose(out2, ref(x2, pe2), atol=1e-6, rtol=1e-6)

    # 3) batch == 1 collapsed (lane/sublane-dense 2-D) path.
    S3, B3, D3 = 16, 1, 128
    pe3 = make_positional_encoding_table(D3, 64)
    x3 = jax.random.normal(keys[2], (S3, B3, D3), dtype=jnp.float32)
    out3 = jax.block_until_ready(positional_encoding_forward(x3, pe3, block_seq=8))
    assert jnp.allclose(out3, ref(x3, pe3), atol=1e-6, rtol=1e-6)

    # 4) batch >= 8 dense 3-D path with in-kernel pe broadcast.
    S4, B4, D4 = 16, 8, 128
    pe4 = make_positional_encoding_table(D4, 64)
    x4 = jax.random.normal(keys[3], (S4, B4, D4), dtype=jnp.float32)
    out4 = jax.block_until_ready(positional_encoding_forward(x4, pe4, block_seq=8))
    assert jnp.allclose(out4, ref(x4, pe4), atol=1e-6, rtol=1e-6)

    # 5) Correctness-concern lock-in: seq_len == max_len and seq_len % tS != 0,
    #    so the last pe input block extends past the table (partial-block pad).
    S5, B5, D5, L5 = 20, 8, 128, 20
    pe5 = make_positional_encoding_table(D5, L5)
    x5 = jax.random.normal(keys[4], (S5, B5, D5), dtype=jnp.float32)
    out5 = jax.block_until_ready(positional_encoding_forward(x5, pe5, block_seq=8))
    assert jnp.allclose(out5, ref(x5, pe5), atol=1e-6, rtol=1e-6)

    # 6) bf16 collapsed path (sublane tile 16); table built in the model dtype.
    S6, B6, D6 = 40, 2, 128
    pe6 = make_positional_encoding_table(D6, 64, dtype=jnp.bfloat16)
    x6 = jax.random.normal(keys[5], (S6, B6, D6), dtype=jnp.bfloat16)
    out6 = jax.block_until_ready(positional_encoding_forward(x6, pe6, block_seq=16))
    assert jnp.allclose(out6.astype(jnp.float32),
                        ref(x6, pe6).astype(jnp.float32), atol=1e-2, rtol=1e-2)

    # 7) Automatic block choice on a larger activation (>1 MiB) -> >= 4-step grid.
    S7, B7, D7 = 512, 4, 256
    pe7 = make_positional_encoding_table(D7, 1024)
    x7 = jax.random.normal(keys[6], (S7, B7, D7), dtype=jnp.float32)
    out7 = jax.block_until_ready(positional_encoding_forward(x7, pe7))
    assert jnp.allclose(out7, ref(x7, pe7), atol=1e-6, rtol=1e-6)

    print("KERNEL_OK")
</pallas_src>

<mosaic_0001>
module attributes {stable_mosaic.version = 11 : i64} {
  func.func @_pe_add_3d_kernel(%arg0: i32, %arg1: memref<8x2x32xf32, #tpu.memory_space<vmem>>, %arg2: memref<8x32xf32, #tpu.memory_space<vmem>>, %arg3: memref<8x2x32xf32, #tpu.memory_space<vmem>>) attributes {dimension_semantics = [#tpu.dimension_semantics<parallel>], iteration_bounds = array<i64: 1>, scalar_prefetch = 0 : i64, scratch_operands = 0 : i64, tpu.core_type = #tpu.core_type<tc>, window_params = [{transform_indices = @transform_0, window_bounds = array<i64: 8, 2, 32>}, {transform_indices = @transform_1, window_bounds = array<i64: 8, 32>}, {transform_indices = @transform_2, window_bounds = array<i64: 8, 2, 32>}]} {
    %c0 = arith.constant 0 : index
    %c0_0 = arith.constant 0 : index
    %c0_1 = arith.constant 0 : index
    %0 = vector.load %arg1[%c0, %c0_0, %c0_1] : memref<8x2x32xf32, #tpu.memory_space<vmem>>, vector<8x2x32xf32>
    %c0_2 = arith.constant 0 : index
    %c0_3 = arith.constant 0 : index
    %1 = vector.load %arg2[%c0_2, %c0_3] : memref<8x32xf32, #tpu.memory_space<vmem>>, vector<8x32xf32>
    %2 = vector.shape_cast %1 : vector<8x32xf32> to vector<8x1x32xf32>
    %3 = vector.broadcast %2 : vector<8x1x32xf32> to vector<8x2x32xf32>
    %4 = arith.addf %0, %3 : vector<8x2x32xf32>
    %c0_4 = arith.constant 0 : index
    %c0_5 = arith.constant 0 : index
    %c0_6 = arith.constant 0 : index
    %5 = vector.load %arg3[%c0_4, %c0_5, %c0_6] : memref<8x2x32xf32, #tpu.memory_space<vmem>>, vector<8x2x32xf32>
    tpu.vector_store %arg3[%c0_4, %c0_5, %c0_6], %4 {strides = array<i32>} : memref<8x2x32xf32, #tpu.memory_space<vmem>>, vector<8x2x32xf32>,
    return
  }
  func.func @transform_0(%arg0: i32) -> (i32, i32, i32) {
    %c0_i32 = arith.constant 0 : i32
    %c0_i32_0 = arith.constant 0 : i32
    %c0_i32_1 = arith.constant 0 : i32
    return %arg0, %c0_i32, %c0_i32_0 : i32, i32, i32
  }
  func.func @transform_1(%arg0: i32) -> (i32, i32) {
    %c0_i32 = arith.constant 0 : i32
    %c0_i32_0 = arith.constant 0 : i32
    return %arg0, %c0_i32 : i32, i32
  }
  func.func @transform_2(%arg0: i32) -> (i32, i32, i32) {
    %c0_i32 = arith.constant 0 : i32
    %c0_i32_0 = arith.constant 0 : i32
    %c0_i32_1 = arith.constant 0 : i32
    return %arg0, %c0_i32, %c0_i32_0 : i32, i32, i32
  }
}

</mosaic_0001>

<bundles_post_ra>
// kernel: positional_encoding_forward.1
= control target key start
LH: loop header
LB: loop body
LE: loop exit
PB: predicated region body
PF: predicated region fallthrough
CT: control target
= control target key end

     0   :  { %v26_v1 = vlaneseq  ;;  %v172_v2 = vmov 1966171168   ;;  %s238_s0 = inlined_call_operand.vmem [shape: f32[8,2,32], index: 0, kind: input, shape index: {}]   ;;  %s239_s1 = inlined_call_operand.vmem [shape: f32[64,32], index: 1, kind: input, shape index: {}]   ;;  %s240_s2 = inlined_call_operand.hbm [shape: f32[8,2,32], index: 2, kind: output, shape index: {}]  }
   0x1   :  { %v20_v0 = vld [vmem:[%s239_s1] sm:$0xff]  ;;  %v24_v3 = vunpack.c.l.s4 %v172_v2 }
   0x2   :  { %v27_v4 = vshrl.u32 %v26_v1, 7  ;;  %v22_v6 = vcombine.high %v20_v0, %v20_v0 }
   0x3   :  { %v25_v5 = vunpack.c.0.s8 %v24_v3 }
   0x4   :  { %7 = vsyncpa [#allocation3], 0  ;;  %v73_v9 = vsub.s32 0, %v27_v4  ;;  %v12_v15 = vld [vmem:[%s238_s0] sm:$0x3]  ;;  %vm119_vm0 = vcmask 254976  }
   0x5   :  { %v28_v7 = vsub.s32 %v25_v5, %v27_v4  ;;  %v16_v19 = vld [vmem:[%s238_s0 + $0x8] sm:$0x3]  ;;  %v13_v21 = vld [vmem:[%s238_s0 + $0x2] sm:$0x3]  ;;  %v14_v22 = vld [vmem:[%s238_s0 + $0x4] sm:$0x3] }
   0x6   :  { %v17_v29 = vld [vmem:[%s238_s0 + $0xa] sm:$0x3]  ;;  %v18_v30 = vld [vmem:[%s238_s0 + $0xc] sm:$0x3]  ;;  %v15_v31 = vld [vmem:[%s238_s0 + $0x6] sm:$0x3] }
   0x7   :  { %v29_v8 = vrot.slane %v20_v0, %v28_v7  ;;  %v36_v10 = vrot.slane %v22_v6, %v28_v7  ;;  %v19_v39 = vld [vmem:[%s238_s0 + $0xe] sm:$0x3]  ;;  %s173_s26 = smov [#allocation2]  }
   0x8   :  { %s133_s27 = sshll.u32 %s173_s26, 4  ;;  %s134_s27 = int_to_ptr.vmem [resolvable:$true] %s133_s27 }
   0x9   :  { %v45_v11 = vrot.slane %v29_v8, %v28_v7  ;;  %v37_v12 = vcombine.high %v29_v8, %v29_v8  ;;  %v52_v13 = vrot.slane %v36_v10, %v28_v7  ;;  %v38_v14 = vcombine.high %v36_v10, %v36_v10  ;;  %s148_s0 = scalar_lea.vmem %s134_s27, 256  ;;  %p153_p1 = scmp.lt.s32.totalorder %s134_s27, %s134_s27 }
   0xa   :  { %p149_p0 = scmp.ne.s32.totalorder %s134_s27, %s148_s0  ;;  %p154_p2 = scmp.lt.s32.totalorder %s148_s0, %s148_s0 }
   0xb   :  { %v74_v16 = vrot.slane %v45_v11, %v73_v9  ;;  %v59_v17 = vrot.slane %v37_v12, %v28_v7  ;;  %v67_v18 = vcombine.high %v45_v11, %v45_v11  ;;  %v90_v20 = vrot.slane %v52_v13, %v73_v9 }
   0xc   :  { %v66_v23 = vrot.slane %v38_v14, %v28_v7  ;;  %v68_v24 = vcombine.high %v52_v13, %v52_v13  ;;  %p155_p3 = por %p154_p2, %p153_p1 }
   0xd   :  { %v111_v25 = vadd.f32 %v74_v16, %v12_v15  ;;  %v78_v26 = vrot.slane %v59_v17, %v73_v9  ;;  %v82_v27 = vrot.slane %v67_v18, %v73_v9  ;;  %v69_v28 = vcombine.high %v59_v17, %v59_v17 }
   0xe   :  { %v115_v32 = vadd.f32 %v90_v20, %v16_v19  ;;  %v94_v33 = vrot.slane %v66_v23, %v73_v9  ;;  %v98_v34 = vrot.slane %v68_v24, %v73_v9  ;;  %v70_v35 = vcombine.high %v66_v23, %v66_v23  ;;  %p156_p4 = pnand %p155_p3, %p149_p0 }
   0xf   :  { %120 = vst.msk [vmem:[#allocation2] sm:$0x3] %vm119_vm0, %v111_v25  ;;  %v112_v36 = vadd.f32 %v78_v26, %v13_v21  ;;  %v113_v37 = vadd.f32 %v82_v27, %v14_v22  ;;  %v86_v38 = vrot.slane %v69_v28, %v73_v9 }
  0x10   :  { %124 = vst.msk [vmem:[#allocation2 + $0x8] sm:$0x3] %vm119_vm0, %v115_v32  ;;  %v116_v40 = vadd.f32 %v94_v33, %v17_v29  ;;  %v117_v41 = vadd.f32 %v98_v34, %v18_v30  ;;  %v102_v42 = vrot.slane %v70_v35, %v73_v9 }
  0x11   :  { %121 = vst.msk [vmem:[#allocation2 + $0x2] sm:$0x3] %vm119_vm0, %v112_v36  ;;  %122 = vst.msk [vmem:[#allocation2 + $0x4] sm:$0x3] %vm119_vm0, %v113_v37  ;;  %v114_v43 = vadd.f32 %v86_v38, %v15_v31 }
  0x12   :  { %125 = vst.msk [vmem:[#allocation2 + $0xa] sm:$0x3] %vm119_vm0, %v116_v40  ;;  %126 = vst.msk [vmem:[#allocation2 + $0xc] sm:$0x3] %vm119_vm0, %v117_v41  ;;  %v118_v44 = vadd.f32 %v102_v42, %v19_v39 }
  0x13   :  { %123 = vst.msk [vmem:[#allocation2 + $0x6] sm:$0x3] %vm119_vm0, %v114_v43 }
  0x14   :  { %127 = vst.msk [vmem:[#allocation2 + $0xe] sm:$0x3] %vm119_vm0, %v118_v44 }
  0x15   :  { %159 = shalt.err (!%p156_p4)
}
  0x16   :  { %s160_s30 = scalar_lea.hbm %s240_s2, 256 }
  0x17   :  { %p161_p5 = scmp.ne.s32.totalorder %s240_s2, %s160_s30  ;;  %p164_p6 = scmp.lt.u32.totalorder %s160_s30, %s240_s2 }
  0x19   :  { %p166_p7 = pnand %p164_p6, %p161_p5 }
  0x1b   :  { %169 = shalt.err (!%p166_p7)
}
  0x1c   :  { %s174_s7 = smov 32   ;;  %s175_s8 = smov 2  }
  0x1d   :  { %139 = dma.vmem_to_hbm [thread:$0]  %s134_s27, 256, %s240_s2, [#allocation3], %s174_s7, %s174_s7, %s175_s8  }
  0x1e   :  { %170 = dma.done.wait [#allocation3], 256  }
  0x1f   :  { %171 = vsyncadd [#allocation3], 4294967040 }
  0x20   :  { %143 = vsyncpa [#allocation3], 1 }

</bundles_post_ra>
